<compile_context>
chip_gen: v5e
topology: v5e:2x2
jax: 0.10.0
libtpu: 0.0.40
codegen_flags: <defaults>
</compile_context>

<pallas_src>
import functools

import jax
import jax.numpy as jnp
from jax import lax
from jax.experimental import pallas as pl
from jax.experimental.pallas import tpu as pltpu

LANES = 128
# (2048, 128) f32 block = 1 MiB; 2 inputs x 2 pipeline buffers = 4 MiB VMEM.
MAX_BLOCK_ROWS = 2048


def _iou_kernel(x_ref, t_ref, inter_ref, total_ref, *,
                block_rows, inner_steps, full_rows, rem_lanes, needs_mask):
    p = pl.program_id(0)   # parallel split (TensorCore) axis
    i = pl.program_id(1)   # sequential reduction axis

    # (Re)initialize the per-core accumulators at the start of each inner sweep.
    @pl.when(i == 0)
    def _():
        inter_ref[...] = jnp.zeros_like(inter_ref)
        total_ref[...] = jnp.zeros_like(total_ref)

    x = jax.nn.sigmoid(x_ref[...].astype(jnp.float32))
    t = t_ref[...].astype(jnp.float32)

    if needs_mask:
        # Mask out-of-range elements of the (possibly phantom / partial) block.
        # Uses the *logical* block index so clamped / garbage data is zeroed.
        # Cheap VPU filler: this kernel is HBM-bandwidth bound.
        logical_blk = p * inner_steps + i
        row_ids = lax.broadcasted_iota(jnp.int32, (block_rows, LANES), 0)
        lane_ids = lax.broadcasted_iota(jnp.int32, (block_rows, LANES), 1)
        g_row = logical_blk * block_rows + row_ids
        mask = (g_row < full_rows) | ((g_row == full_rows) & (lane_ids < rem_lanes))
        x = jnp.where(mask, x, 0.0)
        t = jnp.where(mask, t, 0.0)

    # Pure VPU partial reduce to per-lane sums; accumulate in the resident
    # (1, 1, 128) output block. Final cross-lane reduce happens in the wrapper.
    inter_ref[...] += jnp.sum(x * t, axis=0, keepdims=True).reshape(1, 1, LANES)
    total_ref[...] += jnp.sum(x + t, axis=0, keepdims=True).reshape(1, 1, LANES)


def iou_loss(inputs, targets, smooth=1e-6):
    """Pallas TPU implementation of IoULoss.forward."""
    x = inputs.reshape(-1)
    t = targets.reshape(-1)
    n = x.shape[0]

    # Reshape flat view to lane-dense (rows, 128). Only if n is not a multiple
    # of 128 do we pay for a copy-pad (padded tail is masked in-kernel).
    rows = -(-n // LANES)
    padded = rows * LANES
    if padded != n:
        x = jnp.pad(x, (0, padded - n))
        t = jnp.pad(t, (0, padded - n))
    x2 = x.reshape(rows, LANES)
    t2 = t.reshape(rows, LANES)

    # Block sizing: as large as possible, multiple of 8 sublanes, <= rows.
    if rows >= 8:
        block_rows = min(MAX_BLOCK_ROWS, (rows // 8) * 8)
    else:
        block_rows = rows  # full-array block (allowed: equals array dims)
    num_blocks = -(-rows // block_rows)

    # Split across 2 TensorCores (v7x); single range otherwise.
    split = 2 if num_blocks >= 2 else 1
    inner_steps = -(-num_blocks // split)

    needs_mask = (padded != n) or (rows % block_rows != 0) or (num_blocks % split != 0)
    full_rows = n // LANES
    rem_lanes = n % LANES

    kernel = functools.partial(
        _iou_kernel,
        block_rows=block_rows,
        inner_steps=inner_steps,
        full_rows=full_rows,
        rem_lanes=rem_lanes,
        needs_mask=needs_mask,
    )

    def in_map(p_, i_):
        # Clamp so phantom steps (when num_blocks % split != 0) stay in bounds;
        # their contribution is zeroed by the in-kernel mask.
        return (jnp.minimum(p_ * inner_steps + i_, num_blocks - 1), 0)

    bytes_accessed = (x2.size * x2.dtype.itemsize
                      + t2.size * t2.dtype.itemsize
                      + 2 * split * LANES * 4)

    inter_p, total_p = pl.pallas_call(
        kernel,
        out_shape=(
            jax.ShapeDtypeStruct((split, 1, LANES), jnp.float32),
            jax.ShapeDtypeStruct((split, 1, LANES), jnp.float32),
        ),
        grid_spec=pltpu.PrefetchScalarGridSpec(
            num_scalar_prefetch=0,
            grid=(split, inner_steps),
            in_specs=[
                pl.BlockSpec((block_rows, LANES), in_map),
                pl.BlockSpec((block_rows, LANES), in_map),
            ],
            out_specs=[
                pl.BlockSpec((1, 1, LANES), lambda p_, i_: (p_, 0, 0)),
                pl.BlockSpec((1, 1, LANES), lambda p_, i_: (p_, 0, 0)),
            ],
        ),
        compiler_params=pltpu.CompilerParams(
            dimension_semantics=("parallel", "arbitrary"),
        ),
        cost_estimate=pl.CostEstimate(
            flops=5 * n,
            transcendentals=n,
            bytes_accessed=int(bytes_accessed),
        ),
    )(x2, t2)

    inter = jnp.sum(inter_p)
    total = jnp.sum(total_p)
    union = total - inter
    smooth = jnp.float32(smooth)
    return jnp.float32(1.0) - (inter + smooth) / (union + smooth)


def iou_loss_ref(inputs, targets, smooth=1e-6):
    x = jax.nn.sigmoid(inputs.astype(jnp.float32)).reshape(-1)
    t = targets.astype(jnp.float32).reshape(-1)
    inter = jnp.sum(x * t)
    total = jnp.sum(x + t)
    union = total - inter
    return 1.0 - (inter + smooth) / (union + smooth)


if __name__ == "__main__":
    key = jax.random.PRNGKey(0)
    k1, k2, k3, k4 = jax.random.split(key, 4)

    # Main case: segmentation logits/targets pair (NCHW), lane-aligned size.
    x = jax.random.normal(k1, (2, 4, 16, 16), dtype=jnp.float32)
    t = (jax.random.uniform(k2, (2, 4, 16, 16)) > 0.5).astype(jnp.float32)
    loss = jax.block_until_ready(iou_loss(x, t))
    ref = jax.block_until_ready(iou_loss_ref(x, t))
    assert jnp.allclose(loss, ref, atol=1e-5, rtol=1e-5), (loss, ref)

    # Unaligned case: exercises the copy-pad + in-kernel masking path.
    x_odd = jax.random.normal(k3, (3, 5, 7, 11), dtype=jnp.float32)
    t_odd = (jax.random.uniform(k4, (3, 5, 7, 11)) > 0.5).astype(jnp.float32)
    loss_odd = jax.block_until_ready(iou_loss(x_odd, t_odd))
    ref_odd = jax.block_until_ready(iou_loss_ref(x_odd, t_odd))
    assert jnp.allclose(loss_odd, ref_odd, atol=1e-5, rtol=1e-5), (loss_odd, ref_odd)

    print("KERNEL_OK")
</pallas_src>

<mosaic_0001>
module attributes {stable_mosaic.version = 11 : i64} {
  func.func @_iou_kernel(%arg0: i32, %arg1: i32, %arg2: memref<16x128xf32, #tpu.memory_space<vmem>>, %arg3: memref<16x128xf32, #tpu.memory_space<vmem>>, %arg4: memref<1x1x128xf32, #tpu.memory_space<vmem>>, %arg5: memref<1x1x128xf32, #tpu.memory_space<vmem>>) attributes {dimension_semantics = [#tpu.dimension_semantics<parallel>, #tpu.dimension_semantics<arbitrary>], iteration_bounds = array<i64: 1, 1>, scalar_prefetch = 0 : i64, scratch_operands = 0 : i64, tpu.core_type = #tpu.core_type<tc>, window_params = [{transform_indices = @transform_0, window_bounds = array<i64: 16, 128>}, {transform_indices = @transform_1, window_bounds = array<i64: 16, 128>}, {transform_indices = @transform_2, window_bounds = array<i64: 1, 1, 128>}, {transform_indices = @transform_3, window_bounds = array<i64: 1, 1, 128>}]} {
    %c0_i32 = arith.constant 0 : i32
    %0 = arith.cmpi eq, %arg1, %c0_i32 : i32
    %1 = arith.extui %0 : i1 to i32
    %c0_i32_0 = arith.constant 0 : i32
    %2 = arith.cmpi ne, %1, %c0_i32_0 : i32
    scf.if %2 {
      %cst_18 = arith.constant 0.000000e+00 : f32
      %24 = vector.broadcast %cst_18 : f32 to vector<1x1x128xf32>
      %c0_19 = arith.constant 0 : index
      %c0_20 = arith.constant 0 : index
      %c0_21 = arith.constant 0 : index
      %25 = vector.load %arg4[%c0_19, %c0_20, %c0_21] : memref<1x1x128xf32, #tpu.memory_space<vmem>>, vector<1x1x128xf32>
      tpu.vector_store %arg4[%c0_19, %c0_20, %c0_21], %24 {strides = array<i32>} : memref<1x1x128xf32, #tpu.memory_space<vmem>>, vector<1x1x128xf32>,
      %cst_22 = arith.constant 0.000000e+00 : f32
      %26 = vector.broadcast %cst_22 : f32 to vector<1x1x128xf32>
      %c0_23 = arith.constant 0 : index
      %c0_24 = arith.constant 0 : index
      %c0_25 = arith.constant 0 : index
      %27 = vector.load %arg5[%c0_23, %c0_24, %c0_25] : memref<1x1x128xf32, #tpu.memory_space<vmem>>, vector<1x1x128xf32>
      tpu.vector_store %arg5[%c0_23, %c0_24, %c0_25], %26 {strides = array<i32>} : memref<1x1x128xf32, #tpu.memory_space<vmem>>, vector<1x1x128xf32>,
    } else {
    }
    %c0 = arith.constant 0 : index
    %c0_1 = arith.constant 0 : index
    %3 = vector.load %arg2[%c0, %c0_1] : memref<16x128xf32, #tpu.memory_space<vmem>>, vector<16x128xf32>
    %4 = arith.negf %3 : vector<16x128xf32>
    %5 = math.exp %4 : vector<16x128xf32>
    %cst = arith.constant 1.000000e+00 : f32
    %6 = vector.broadcast %cst : f32 to vector<16x128xf32>
    %7 = arith.addf %6, %5 : vector<16x128xf32>
    %8 = arith.divf %6, %7 : vector<16x128xf32>
    %c0_2 = arith.constant 0 : index
    %c0_3 = arith.constant 0 : index
    %9 = vector.load %arg3[%c0_2, %c0_3] : memref<16x128xf32, #tpu.memory_space<vmem>>, vector<16x128xf32>
    %c0_4 = arith.constant 0 : index
    %c0_5 = arith.constant 0 : index
    %c0_6 = arith.constant 0 : index
    %10 = vector.load %arg4[%c0_4, %c0_5, %c0_6] : memref<1x1x128xf32, #tpu.memory_space<vmem>>, vector<1x1x128xf32>
    %11 = arith.mulf %8, %9 : vector<16x128xf32>
    %cst_7 = arith.constant dense<0.000000e+00> : vector<128xf32>
    %12 = vector.multi_reduction <add>, %11, %cst_7 [0] : vector<16x128xf32> to vector<128xf32>
    %13 = vector.shape_cast %12 : vector<128xf32> to vector<1x128xf32>
    %14 = vector.shape_cast %13 : vector<1x128xf32> to vector<1x1x128xf32>
    %15 = arith.addf %10, %14 : vector<1x1x128xf32>
    %c0_8 = arith.constant 0 : index
    %c0_9 = arith.constant 0 : index
    %c0_10 = arith.constant 0 : index
    %16 = vector.load %arg4[%c0_8, %c0_9, %c0_10] : memref<1x1x128xf32, #tpu.memory_space<vmem>>, vector<1x1x128xf32>
    tpu.vector_store %arg4[%c0_8, %c0_9, %c0_10], %15 {strides = array<i32>} : memref<1x1x128xf32, #tpu.memory_space<vmem>>, vector<1x1x128xf32>,
    %c0_11 = arith.constant 0 : index
    %c0_12 = arith.constant 0 : index
    %c0_13 = arith.constant 0 : index
    %17 = vector.load %arg5[%c0_11, %c0_12, %c0_13] : memref<1x1x128xf32, #tpu.memory_space<vmem>>, vector<1x1x128xf32>
    %18 = arith.addf %8, %9 : vector<16x128xf32>
    %cst_14 = arith.constant dense<0.000000e+00> : vector<128xf32>
    %19 = vector.multi_reduction <add>, %18, %cst_14 [0] : vector<16x128xf32> to vector<128xf32>
    %20 = vector.shape_cast %19 : vector<128xf32> to vector<1x128xf32>
    %21 = vector.shape_cast %20 : vector<1x128xf32> to vector<1x1x128xf32>
    %22 = arith.addf %17, %21 : vector<1x1x128xf32>
    %c0_15 = arith.constant 0 : index
    %c0_16 = arith.constant 0 : index
    %c0_17 = arith.constant 0 : index
    %23 = vector.load %arg5[%c0_15, %c0_16, %c0_17] : memref<1x1x128xf32, #tpu.memory_space<vmem>>, vector<1x1x128xf32>
    tpu.vector_store %arg5[%c0_15, %c0_16, %c0_17], %22 {strides = array<i32>} : memref<1x1x128xf32, #tpu.memory_space<vmem>>, vector<1x1x128xf32>,
    return
  }
  func.func @transform_0(%arg0: i32, %arg1: i32) -> (i32, i32) {
    %c1_i32 = arith.constant 1 : i32
    %0 = arith.muli %arg0, %c1_i32 : i32
    %1 = arith.addi %0, %arg1 : i32
    %c0_i32 = arith.constant 0 : i32
    %2 = arith.minsi %1, %c0_i32 : i32
    %c0_i32_0 = arith.constant 0 : i32
    %c0_i32_1 = arith.constant 0 : i32
    return %2, %c0_i32_0 : i32, i32
  }
  func.func @transform_1(%arg0: i32, %arg1: i32) -> (i32, i32) {
    %c1_i32 = arith.constant 1 : i32
    %0 = arith.muli %arg0, %c1_i32 : i32
    %1 = arith.addi %0, %arg1 : i32
    %c0_i32 = arith.constant 0 : i32
    %2 = arith.minsi %1, %c0_i32 : i32
    %c0_i32_0 = arith.constant 0 : i32
    %c0_i32_1 = arith.constant 0 : i32
    return %2, %c0_i32_0 : i32, i32
  }
  func.func @transform_2(%arg0: i32, %arg1: i32) -> (i32, i32, i32) {
    %c0_i32 = arith.constant 0 : i32
    %c0_i32_0 = arith.constant 0 : i32
    %c0_i32_1 = arith.constant 0 : i32
    return %arg0, %c0_i32, %c0_i32_0 : i32, i32, i32
  }
  func.func @transform_3(%arg0: i32, %arg1: i32) -> (i32, i32, i32) {
    %c0_i32 = arith.constant 0 : i32
    %c0_i32_0 = arith.constant 0 : i32
    %c0_i32_1 = arith.constant 0 : i32
    return %arg0, %c0_i32, %c0_i32_0 : i32, i32, i32
  }
}

</mosaic_0001>

<bundles_post_ra>
// kernel: tpu_custom_call.1
= control target key start
LH: loop header
LB: loop body
LE: loop exit
PB: predicated region body
PF: predicated region fallthrough
CT: control target
= control target key end

     0   :  { %9 = vsyncpa [#allocation3], 0  ;;  %s337_s0 = inlined_call_operand.hbm [shape: f32[16,128], index: 0, kind: input, shape index: {}]   ;;  %s338_s1 = inlined_call_operand.hbm [shape: f32[16,128], index: 1, kind: input, shape index: {}]   ;;  %s339_s2 = inlined_call_operand.hbm [shape: f32[1,1,128], index: 2, kind: output, shape index: {0}]   ;;  %s340_s3 = inlined_call_operand.hbm [shape: f32[1,1,128], index: 3, kind: output, shape index: {1}]  }
   0x1   :  { %10 = vsyncpa [#allocation6], 0 }
   0x2   :  { %11 = vsyncpa [#allocation4], 0 }
   0x3   :  { %12 = vsyncpa [#allocation9], 0  ;;  %s23_s14 = sshll.u32 %s337_s0, 4  ;;  %s298_s15 = smov [#allocation2]   ;;  %s24_s14 = int_to_ptr.hbm [resolvable:$true] %s23_s14 }
   0x4   :  { %s25_s16 = sshll.u32 %s298_s15, 4  ;;  %s42_s19 = sshll.u32 %s338_s1, 4  ;;  %s26_s16 = int_to_ptr.vmem [resolvable:$true] %s25_s16  ;;  %s43_s19 = int_to_ptr.hbm [resolvable:$true] %s42_s19 }
   0x5   :  { %s299_s20 = smov 128   ;;  %s300_s21 = smov 8  }
   0x6   :  { %31 = dma.hbm_to_vmem [thread:$0]  %s24_s14, 256, %s26_s16, [#allocation3], %s299_s20, %s299_s20, %s300_s21  }
   0x7   :  { %s301_s22 = smov [#allocation5]  }
   0x8   :  { %s44_s23 = sshll.u32 %s301_s22, 4  ;;  %s45_s23 = int_to_ptr.vmem [resolvable:$true] %s44_s23 }
   0x9   :  { %50 = dma.hbm_to_vmem [thread:$0]  %s43_s19, 256, %s45_s23, [#allocation6], %s299_s20, %s299_s20, %s300_s21  }
   0xa   :  { %290 = dma.done.wait [#allocation3], 256  }
   0xb   :  { %291 = vsyncadd [#allocation3], 4294967040 }
   0xc   :  { %292 = dma.done.wait [#allocation6], 256  }
   0xd   :  { %293 = vsyncadd [#allocation6], 4294967040  ;;  %v302_v0 = vmov 0.0   ;;  %v73_v1 = vld [vmem:[#allocation2] sm:$0xff]  ;;  %v74_v2 = vld [vmem:[#allocation2 + $0x8] sm:$0xff]  ;;  %s303_s0 = smov [#allocation7]  }
   0xe   :  { %71 = vst [vmem:[#allocation7] sm:$0x1] %v302_v0  ;;  %v177_v3 = vmul.f32 -1.442695, %v73_v1  ;;  %v178_v4 = vmul.f32 -1.442695, %v74_v2 }
   0xf   :  { %72 = vst [vmem:[#allocation8] sm:$0x1] %v302_v0  ;;  %v113_v25 = vld [vmem:[#allocation5] sm:$0xff]  ;;  %v114_v27 = vld [vmem:[#allocation5 + $0x8] sm:$0xff]  ;;  %s144_s1 = sshll.u32 %s303_s0, 4  ;;  %s146_s26 = sshll.u32 %s339_s2, 4  ;;  %s145_s1 = int_to_ptr.vmem [resolvable:$true] %s144_s1  ;;  %s147_s26 = int_to_ptr.hbm [resolvable:$true] %s146_s26 }
  0x10   :  { %186 = vpow2.f32 %v177_v3  ;;  %s304_s27 = smov [#allocation8]   ;;  %s157_s4 = sshll.u32 %s340_s3, 4  ;;  %s158_s4 = int_to_ptr.hbm [resolvable:$true] %s157_s4 }
  0x11   :  { %188 = vpow2.f32 %v178_v4  ;;  %s155_s28 = sshll.u32 %s304_s27, 4  ;;  %s156_s28 = int_to_ptr.vmem [resolvable:$true] %s155_s28 }
  0x15   :  { %v115_v47 = vld [vmem:[#allocation7] sm:$0x1] }
  0x16   :  { %v187_v5 = vpop.eup %186  ;;  %v127_v48 = vld [vmem:[#allocation8] sm:$0x1] }
  0x17   :  { %v189_v6 = vpop.eup %188  ;;  %v81_v7 = vadd.f32 1.0, %v187_v5 }
  0x18   :  { %v82_v8 = vadd.f32 1.0, %v189_v6 }
  0x19   :  { %190 = vrcp.f32 %v81_v7  ;;  %vm88_vm0 = vweird.f32 %v81_v7  ;;  %v94_v12 = vand.u32 2147483648, %v81_v7  ;;  %v92_v15 = vand.u32 2147483647, %v81_v7 }
  0x1a   :  { %192 = vrcp.f32 %v82_v8  ;;  %v109_v16 = vand.u32 2147483648, %v82_v8  ;;  %vm103_vm2 = vweird.f32 %v82_v8  ;;  %v107_v18 = vand.u32 2147483647, %v82_v8 }
  0x1b   :  { %v95_v20 = vor.u32 1.1754944e-38, %v94_v12  ;;  %vm93_vm5 = vcmp.eq.f32.partialorder %v92_v15, 8.507059e+37 }
  0x1c   :  { %v110_v23 = vor.u32 1.1754944e-38, %v109_v16  ;;  %vm108_vm7 = vcmp.eq.f32.partialorder %v107_v18, 8.507059e+37 }
  0x1f   :  { %v191_v9 = vpop.eup %190 }
  0x20   :  { %v193_v10 = vpop.eup %192  ;;  %v84_v11 = vmul.f32 %v191_v9, %v81_v7  ;;  %vm89_vm1 = vweird.f32 %v191_v9 }
  0x21   :  { %v99_v13 = vmul.f32 %v193_v10, %v82_v8  ;;  %vm104_vm3 = vweird.f32 %v193_v10  ;;  %vm90_vm4 = vmor %vm88_vm0, %vm89_vm1 }
  0x22   :  { %v85_v14 = vsub.f32 1.0, %v84_v11  ;;  %vm105_vm6 = vmor %vm103_vm2, %vm104_vm3 }
  0x23   :  { %v100_v17 = vsub.f32 1.0, %v99_v13 }
  0x24   :  { %v86_v19 = vmul.f32 %v191_v9, %v85_v14 }
  0x25   :  { %v101_v21 = vmul.f32 %v193_v10, %v100_v17 }
  0x26   :  { %v87_v22 = vadd.f32 %v191_v9, %v86_v19 }
  0x27   :  { %v102_v24 = vadd.f32 %v193_v10, %v101_v21 }
  0x28   :  { %v91_v26 = vsel %vm90_vm4, %v191_v9, %v87_v22 }
  0x29   :  { %v96_v28 = vsel %vm93_vm5, %v95_v20, %v91_v26  ;;  %v106_v29 = vsel %vm105_vm6, %v193_v10, %v102_v24 }
  0x2a   :  { %v111_v30 = vsel %vm108_vm7, %v110_v23, %v106_v29  ;;  %v116_v31 = vmul.f32 %v113_v25, %v96_v28  ;;  %v128_v32 = vadd.f32 %v113_v25, %v96_v28 }
  0x2b   :  { %v117_v33 = vmul.f32 %v114_v27, %v111_v30  ;;  %v129_v34 = vadd.f32 %v114_v27, %v111_v30 }
  0x2d   :  { %v118_v35 = vadd.f32 %v117_v33, %v116_v31  ;;  %v130_v36 = vadd.f32 %v129_v34, %v128_v32 }
  0x2f   :  { %v119_v37 = vrot.slane %v118_v35, 4  ;;  %v131_v38 = vrot.slane %v130_v36, 4 }
  0x31   :  { %v120_v39 = vadd.f32 %v119_v37, %v118_v35  ;;  %v132_v40 = vadd.f32 %v131_v38, %v130_v36 }
  0x33   :  { %v121_v41 = vrot.slane %v120_v39, 2  ;;  %v133_v42 = vrot.slane %v132_v40, 2 }
  0x35   :  { %v122_v43 = vadd.f32 %v121_v41, %v120_v39  ;;  %v134_v44 = vadd.f32 %v133_v42, %v132_v40 }
  0x37   :  { %v123_v45 = vrot.slane %v122_v43, 1  ;;  %v135_v46 = vrot.slane %v134_v44, 1 }
  0x39   :  { %v124_v49 = vadd.f32 %v123_v45, %v122_v43  ;;  %v136_v50 = vadd.f32 %v135_v46, %v134_v44 }
  0x3b   :  { %v125_v51 = vadd.f32 %v124_v49, %v115_v47  ;;  %v137_v52 = vadd.f32 %v136_v50, %v127_v48 }
  0x3d   :  { %126 = vst [vmem:[#allocation7] sm:$0x1] %v125_v51 }
  0x3e   :  { %138 = vst [vmem:[#allocation8] sm:$0x1] %v137_v52  ;;  %149 = dma.vmem_to_hbm [thread:$0]  %s145_s1, 16, %s147_s26, [#allocation4]  }
  0x3f   :  { %160 = dma.vmem_to_hbm [thread:$0]  %s156_s28, 16, %s158_s4, [#allocation9]  }
  0x40   :  { %294 = dma.done.wait [#allocation4], 16  }
  0x41   :  { %295 = vsyncadd [#allocation4], 4294967280 }
  0x42   :  { %296 = dma.done.wait [#allocation9], 16  }
  0x43   :  { %297 = vsyncadd [#allocation9], 4294967280 }
  0x44   :  { %169 = vsyncpa [#allocation3], 1 }
  0x45   :  { %170 = vsyncpa [#allocation6], 1 }
  0x46   :  { %171 = vsyncpa [#allocation4], 1 }
  0x47   :  { %172 = vsyncpa [#allocation9], 1 }

</bundles_post_ra>
